<compile_context>
chip_gen: v7x
topology: tpu7x:2x2x1
jax: 0.10.0
libtpu: 0.0.40
codegen_flags: <defaults>
</compile_context>

<pallas_src>
import functools

import jax
import jax.numpy as jnp
from jax import lax
from jax.experimental import pallas as pl
from jax.experimental.pallas import tpu as pltpu


def rnn_last_kernel(x_ref, len_ref, wih_t_ref, whh_t_ref, b_ref,
                    wlin_ref, blin_ref, out_ref,
                    h_scr, last_scr, pre_scr):
    # x_ref:     (Tblk*Bpad, D)  time-major, flattened (t, b) rows
    # len_ref:   (Bpad, 1) int32
    # wih_t_ref: (D, H)           (W_ih transposed)
    # whh_t_ref: (H, H)           (W_hh transposed)
    # b_ref:     (1, H)           (b_ih + b_hh)
    # wlin_ref:  (1, H)
    # blin_ref:  (1, 1)
    # out_ref:   (Bpad, 1)
    # h_scr/last_scr: (Bpad, H) f32 persistent scratch; pre_scr: (Tblk*Bpad, H) f32
    bpad, hidden = h_scr.shape
    tblk = x_ref.shape[0] // bpad
    tb = pl.program_id(0)

    @pl.when(tb == 0)
    def _init():
        h_scr[...] = jnp.zeros_like(h_scr)
        last_scr[...] = jnp.zeros_like(last_scr)

    # Hoisted input projection: one fat matmul + one bias add for the whole time block,
    # instead of Tblk degenerate matmuls + Tblk bias broadcasts inside the recurrence.
    pre_scr[...] = (
        jnp.dot(x_ref[...], wih_t_ref[...], preferred_element_type=jnp.float32)
        + b_ref[...]
    )

    whh = whh_t_ref[...]          # read the recurrent weight once, keep out of the loop body
    lens = len_ref[...]           # (Bpad, 1) int32
    t0 = tb * tblk                # global timestep offset of this block

    def step(t, carry):
        start = pl.multiple_of(t * bpad, bpad)
        pre_t = pre_scr[pl.ds(start, bpad), :]                      # (Bpad, H)
        h = jnp.tanh(pre_t + jnp.dot(h_scr[...], whh,
                                     preferred_element_type=jnp.float32))
        h_scr[...] = h
        is_last = lens == (t0 + t + 1)                              # (Bpad, 1)
        last_scr[...] = jnp.where(is_last, h, last_scr[...])
        return carry

    # Unroll: short, static trip count -> lets the scheduler interleave tanh (EUP),
    # the W_hh matmul (MXU) and the select (VPU) across adjacent steps.
    unroll = True if tblk <= 16 else 8
    lax.fori_loop(0, tblk, step, 0, unroll=unroll)

    @pl.when(tb == pl.num_programs(0) - 1)
    def _finalize():
        # Linear(H -> 1): multiply + lane reduction (avoid degenerate N=1 matmul).
        y = jnp.sum(last_scr[...] * wlin_ref[...], axis=-1, keepdims=True) + blin_ref[...]
        out_ref[...] = y


def prepare_params(params):
    """One-time layout prep (transposes / bias fold). Do NOT call per forward pass."""
    hidden = params["w_hh"].shape[0]
    return {
        "w_ih_t": jnp.asarray(params["w_ih"].T),                    # (D, H)
        "w_hh_t": jnp.asarray(params["w_hh"].T),                    # (H, H)
        "b": (params["b_ih"] + params["b_hh"]).reshape(1, hidden),  # (1, H)
        "w_lin": params["w_lin"].reshape(1, hidden),                # (1, H)
        "b_lin": params["b_lin"].reshape(1, 1),                     # (1, 1)
    }


@functools.partial(jax.jit, static_argnames=("time_block",))
def minibatch_rnn1(x, lengths, prep, *, time_block=8):
    """x: (T, B, D) time-major f32; lengths: (B,) int; returns (B,) f32."""
    T, B, D = x.shape
    H = prep["w_hh_t"].shape[0]

    # Pad batch to a sublane tile (8 rows) and time to a multiple of the time block.
    bpad = pl.cdiv(B, 8) * 8
    tblk = min(time_block, pl.cdiv(T, 8) * 8)
    tpad = pl.cdiv(T, tblk) * tblk
    if bpad != B or tpad != T:
        x = jnp.pad(x, ((0, tpad - T), (0, bpad - B), (0, 0)))
    lens = lengths.astype(jnp.int32)
    if bpad != B:
        lens = jnp.pad(lens, (0, bpad - B), constant_values=1)
    lens2d = lens.reshape(bpad, 1)

    # Free metadata reshape (row-major contiguous): rows are (t, b) pairs.
    x_flat = x.reshape(tpad * bpad, D)

    grid = (tpad // tblk,)
    out = pl.pallas_call(
        rnn_last_kernel,
        out_shape=jax.ShapeDtypeStruct((bpad, 1), jnp.float32),
        grid_spec=pltpu.PrefetchScalarGridSpec(
            num_scalar_prefetch=0,
            grid=grid,
            in_specs=[
                pl.BlockSpec((tblk * bpad, D), lambda t: (t, 0)),   # x streamed over time blocks
                pl.BlockSpec((bpad, 1), lambda t: (0, 0)),          # lengths (resident)
                pl.BlockSpec((D, H), lambda t: (0, 0)),             # W_ih^T (resident)
                pl.BlockSpec((H, H), lambda t: (0, 0)),             # W_hh^T (resident)
                pl.BlockSpec((1, H), lambda t: (0, 0)),             # b_ih + b_hh
                pl.BlockSpec((1, H), lambda t: (0, 0)),             # W_lin row
                pl.BlockSpec((1, 1), lambda t: (0, 0)),             # b_lin
            ],
            out_specs=pl.BlockSpec((bpad, 1), lambda t: (0, 0)),
            scratch_shapes=[
                pltpu.VMEM((bpad, H), jnp.float32),                 # h state (persistent)
                pltpu.VMEM((bpad, H), jnp.float32),                 # gathered last-valid h
                pltpu.VMEM((tblk * bpad, H), jnp.float32),          # hoisted input projection
            ],
        ),
        compiler_params=pltpu.CompilerParams(
            dimension_semantics=("arbitrary",)),                    # time is a serial recurrence
    )(x_flat, lens2d, prep["w_ih_t"], prep["w_hh_t"], prep["b"],
      prep["w_lin"], prep["b_lin"])
    # TODO(synk): for large B (>=16), add a leading "parallel" batch grid axis so v7x's two
    # TensorCores split the (row-independent) recurrence.
    return out[:B, 0]


def reference(x, lengths, params):
    # Pure-JAX reference of the PyTorch forward (packed RNN == padded RNN when we
    # only read outputs at t < length).
    B = x.shape[1]
    H = params["w_hh"].shape[0]

    def step(h, x_t):
        h = jnp.tanh(x_t @ params["w_ih"].T + params["b_ih"]
                     + h @ params["w_hh"].T + params["b_hh"])
        return h, h

    h0 = jnp.zeros((B, H), jnp.float32)
    _, hs = lax.scan(step, h0, x)                                   # (T, B, H)
    last = hs[lengths - 1, jnp.arange(B), :]                        # (B, H)
    return (last @ params["w_lin"].T + params["b_lin"]).reshape(-1)


def init_params(key, input_size, hidden_size):
    # Deterministic init matching PyTorch's uniform(-1/sqrt(H), 1/sqrt(H)) scheme.
    k = 1.0 / jnp.sqrt(jnp.float32(hidden_size))
    ks = jax.random.split(key, 6)
    u = lambda kk, shape: jax.random.uniform(kk, shape, jnp.float32, -k, k)
    return {
        "w_ih": u(ks[0], (hidden_size, input_size)),
        "w_hh": u(ks[1], (hidden_size, hidden_size)),
        "b_ih": u(ks[2], (hidden_size,)),
        "b_hh": u(ks[3], (hidden_size,)),
        "w_lin": u(ks[4], (1, hidden_size)),
        "b_lin": u(ks[5], (1,)),
    }


if __name__ == "__main__":
    T, B, D_IN, H = 8, 4, 16, 32
    key = jax.random.PRNGKey(0)
    k_x, k_p = jax.random.split(key)

    x = jax.random.normal(k_x, (T, B, D_IN), jnp.float32)           # (seq, batch, input)
    lengths = jnp.array([8, 6, 5, 3], dtype=jnp.int32)              # sorted desc, as PackedSequence
    params = init_params(k_p, D_IN, H)
    prep = prepare_params(params)                                   # one-time weight layout prep

    out = minibatch_rnn1(x, lengths, prep)
    out = jax.block_until_ready(out)

    ref = reference(x, lengths, params)
    assert out.shape == (B,)
    assert jnp.allclose(out, ref, atol=1e-5, rtol=1e-5), (out, ref)
    print("KERNEL_OK")
</pallas_src>

<mosaic_0001>
module attributes {stable_mosaic.version = 11 : i64} {
  func.func @rnn_last_kernel(%arg0: i32, %arg1: memref<64x16xf32, #tpu.memory_space<vmem>>, %arg2: memref<8x1xi32, #tpu.memory_space<vmem>>, %arg3: memref<16x32xf32, #tpu.memory_space<vmem>>, %arg4: memref<32x32xf32, #tpu.memory_space<vmem>>, %arg5: memref<1x32xf32, #tpu.memory_space<vmem>>, %arg6: memref<1x32xf32, #tpu.memory_space<vmem>>, %arg7: memref<1x1xf32, #tpu.memory_space<vmem>>, %arg8: memref<8x1xf32, #tpu.memory_space<vmem>>, %arg9: memref<8x32xf32, #tpu.memory_space<vmem>>, %arg10: memref<8x32xf32, #tpu.memory_space<vmem>>, %arg11: memref<64x32xf32, #tpu.memory_space<vmem>>) attributes {dimension_semantics = [#tpu.dimension_semantics<arbitrary>], iteration_bounds = array<i64: 1>, scalar_prefetch = 0 : i64, scratch_operands = 3 : i64, tpu.core_type = #tpu.core_type<tc>, window_params = [{transform_indices = @transform_0, window_bounds = array<i64: 64, 16>}, {pipeline_mode = #tpu.pipeline_mode<synchronous>, transform_indices = @transform_1, window_bounds = array<i64: 8, 1>}, {pipeline_mode = #tpu.pipeline_mode<synchronous>, transform_indices = @transform_2, window_bounds = array<i64: 16, 32>}, {pipeline_mode = #tpu.pipeline_mode<synchronous>, transform_indices = @transform_3, window_bounds = array<i64: 32, 32>}, {pipeline_mode = #tpu.pipeline_mode<synchronous>, transform_indices = @transform_4, window_bounds = array<i64: 1, 32>}, {pipeline_mode = #tpu.pipeline_mode<synchronous>, transform_indices = @transform_5, window_bounds = array<i64: 1, 32>}, {pipeline_mode = #tpu.pipeline_mode<synchronous>, transform_indices = @transform_6, window_bounds = array<i64: 1, 1>}, {pipeline_mode = #tpu.pipeline_mode<synchronous>, transform_indices = @transform_7, window_bounds = array<i64: 8, 1>}]} {
    %c0_i32 = arith.constant 0 : i32
    %0 = arith.cmpi eq, %arg0, %c0_i32 : i32
    %1 = arith.extui %0 : i1 to i32
    %c0_i32_0 = arith.constant 0 : i32
    %2 = arith.cmpi ne, %1, %c0_i32_0 : i32
    scf.if %2 {
      %cst_112 = arith.constant 0.000000e+00 : f32
      %160 = vector.broadcast %cst_112 : f32 to vector<8x32xf32>
      %c0_113 = arith.constant 0 : index
      %c0_114 = arith.constant 0 : index
      %161 = vector.load %arg9[%c0_113, %c0_114] : memref<8x32xf32, #tpu.memory_space<vmem>>, vector<8x32xf32>
      tpu.vector_store %arg9[%c0_113, %c0_114], %160 {strides = array<i32>} : memref<8x32xf32, #tpu.memory_space<vmem>>, vector<8x32xf32>,
      %cst_115 = arith.constant 0.000000e+00 : f32
      %162 = vector.broadcast %cst_115 : f32 to vector<8x32xf32>
      %c0_116 = arith.constant 0 : index
      %c0_117 = arith.constant 0 : index
      %163 = vector.load %arg10[%c0_116, %c0_117] : memref<8x32xf32, #tpu.memory_space<vmem>>, vector<8x32xf32>
      tpu.vector_store %arg10[%c0_116, %c0_117], %162 {strides = array<i32>} : memref<8x32xf32, #tpu.memory_space<vmem>>, vector<8x32xf32>,
    } else {
    }
    %c0 = arith.constant 0 : index
    %c0_1 = arith.constant 0 : index
    %3 = vector.load %arg1[%c0, %c0_1] : memref<64x16xf32, #tpu.memory_space<vmem>>, vector<64x16xf32>
    %c0_2 = arith.constant 0 : index
    %c0_3 = arith.constant 0 : index
    %4 = vector.load %arg3[%c0_2, %c0_3] : memref<16x32xf32, #tpu.memory_space<vmem>>, vector<16x32xf32>
    %cst = arith.constant dense<0.000000e+00> : vector<64x32xf32>
    %5 = tpu.matmul %3, %4, %cst {dimension_numbers = #tpu.dot_dimension_numbers<[1], [0], [0], [1], [0, 0, 1, 1], [], []>} : vector<64x16xf32>, vector<16x32xf32>, vector<64x32xf32> -> vector<64x32xf32>
    %c0_4 = arith.constant 0 : index
    %c0_5 = arith.constant 0 : index
    %6 = vector.load %arg5[%c0_4, %c0_5] : memref<1x32xf32, #tpu.memory_space<vmem>>, vector<1x32xf32>
    %7 = vector.broadcast %6 : vector<1x32xf32> to vector<64x32xf32>
    %8 = arith.addf %5, %7 : vector<64x32xf32>
    %c0_6 = arith.constant 0 : index
    %c0_7 = arith.constant 0 : index
    %9 = vector.load %arg11[%c0_6, %c0_7] : memref<64x32xf32, #tpu.memory_space<vmem>>, vector<64x32xf32>
    tpu.vector_store %arg11[%c0_6, %c0_7], %8 {strides = array<i32>} : memref<64x32xf32, #tpu.memory_space<vmem>>, vector<64x32xf32>,
    %c0_8 = arith.constant 0 : index
    %c0_9 = arith.constant 0 : index
    %10 = vector.load %arg4[%c0_8, %c0_9] : memref<32x32xf32, #tpu.memory_space<vmem>>, vector<32x32xf32>
    %c0_10 = arith.constant 0 : index
    %c0_11 = arith.constant 0 : index
    %11 = vector.load %arg2[%c0_10, %c0_11] : memref<8x1xi32, #tpu.memory_space<vmem>>, vector<8x1xi32>
    %c8_i32 = arith.constant 8 : i32
    %12 = arith.muli %arg0, %c8_i32 : i32
    %c0_i32_12 = arith.constant 0 : i32
    %c8_i32_13 = arith.constant 8 : i32
    %13 = arith.muli %c0_i32_12, %c8_i32_13 : i32
    %14 = tpu.assume_multiple %13, 8 : i32
    %15 = arith.index_cast %14 : i32 to index
    %c0_14 = arith.constant 0 : index
    %16 = vector.load %arg11[%15, %c0_14] : memref<64x32xf32, #tpu.memory_space<vmem>>, vector<8x32xf32>
    %c0_15 = arith.constant 0 : index
    %c0_16 = arith.constant 0 : index
    %17 = vector.load %arg9[%c0_15, %c0_16] : memref<8x32xf32, #tpu.memory_space<vmem>>, vector<8x32xf32>
    %cst_17 = arith.constant dense<0.000000e+00> : vector<8x32xf32>
    %18 = tpu.matmul %17, %10, %cst_17 {dimension_numbers = #tpu.dot_dimension_numbers<[1], [0], [0], [1], [0, 0, 1, 1], [], []>} : vector<8x32xf32>, vector<32x32xf32>, vector<8x32xf32> -> vector<8x32xf32>
    %19 = arith.addf %16, %18 : vector<8x32xf32>
    %20 = math.tanh %19 : vector<8x32xf32>
    %c0_18 = arith.constant 0 : index
    %c0_19 = arith.constant 0 : index
    %21 = vector.load %arg9[%c0_18, %c0_19] : memref<8x32xf32, #tpu.memory_space<vmem>>, vector<8x32xf32>
    tpu.vector_store %arg9[%c0_18, %c0_19], %20 {strides = array<i32>} : memref<8x32xf32, #tpu.memory_space<vmem>>, vector<8x32xf32>,
    %22 = arith.addi %12, %c0_i32_12 : i32
    %c1_i32 = arith.constant 1 : i32
    %23 = arith.addi %22, %c1_i32 : i32
    %24 = vector.broadcast %23 : i32 to vector<8x1xi32>
    %25 = arith.cmpi eq, %11, %24 : vector<8x1xi32>
    %c0_20 = arith.constant 0 : index
    %c0_21 = arith.constant 0 : index
    %26 = vector.load %arg10[%c0_20, %c0_21] : memref<8x32xf32, #tpu.memory_space<vmem>>, vector<8x32xf32>
    %27 = vector.shape_cast %25 : vector<8x1xi1> to vector<8x1xi1>
    %28 = vector.broadcast %27 : vector<8x1xi1> to vector<8x32xi1>
    %29 = arith.select %28, %20, %26 : vector<8x32xi1>, vector<8x32xf32>
    %c0_22 = arith.constant 0 : index
    %c0_23 = arith.constant 0 : index
    %30 = vector.load %arg10[%c0_22, %c0_23] : memref<8x32xf32, #tpu.memory_space<vmem>>, vector<8x32xf32>
    tpu.vector_store %arg10[%c0_22, %c0_23], %29 {strides = array<i32>} : memref<8x32xf32, #tpu.memory_space<vmem>>, vector<8x32xf32>,
    %c1_i32_24 = arith.constant 1 : i32
    %c8_i32_25 = arith.constant 8 : i32
    %31 = arith.muli %c1_i32_24, %c8_i32_25 : i32
    %32 = tpu.assume_multiple %31, 8 : i32
    %33 = arith.index_cast %32 : i32 to index
    %c0_26 = arith.constant 0 : index
    %34 = vector.load %arg11[%33, %c0_26] : memref<64x32xf32, #tpu.memory_space<vmem>>, vector<8x32xf32>
    %c0_27 = arith.constant 0 : index
    %c0_28 = arith.constant 0 : index
    %35 = vector.load %arg9[%c0_27, %c0_28] : memref<8x32xf32, #tpu.memory_space<vmem>>, vector<8x32xf32>
    %cst_29 = arith.constant dense<0.000000e+00> : vector<8x32xf32>
    %36 = tpu.matmul %35, %10, %cst_29 {dimension_numbers = #tpu.dot_dimension_numbers<[1], [0], [0], [1], [0, 0, 1, 1], [], []>} : vector<8x32xf32>, vector<32x32xf32>, vector<8x32xf32> -> vector<8x32xf32>
    %37 = arith.addf %34, %36 : vector<8x32xf32>
    %38 = math.tanh %37 : vector<8x32xf32>
    %c0_30 = arith.constant 0 : index
    %c0_31 = arith.constant 0 : index
    %39 = vector.load %arg9[%c0_30, %c0_31] : memref<8x32xf32, #tpu.memory_space<vmem>>, vector<8x32xf32>
    tpu.vector_store %arg9[%c0_30, %c0_31], %38 {strides = array<i32>} : memref<8x32xf32, #tpu.memory_space<vmem>>, vector<8x32xf32>,
    %40 = arith.addi %12, %c1_i32_24 : i32
    %c1_i32_32 = arith.constant 1 : i32
    %41 = arith.addi %40, %c1_i32_32 : i32
    %42 = vector.broadcast %41 : i32 to vector<8x1xi32>
    %43 = arith.cmpi eq, %11, %42 : vector<8x1xi32>
    %c0_33 = arith.constant 0 : index
    %c0_34 = arith.constant 0 : index
    %44 = vector.load %arg10[%c0_33, %c0_34] : memref<8x32xf32, #tpu.memory_space<vmem>>, vector<8x32xf32>
    %45 = vector.shape_cast %43 : vector<8x1xi1> to vector<8x1xi1>
    %46 = vector.broadcast %45 : vector<8x1xi1> to vector<8x32xi1>
    %47 = arith.select %46, %38, %44 : vector<8x32xi1>, vector<8x32xf32>
    %c0_35 = arith.constant 0 : index
    %c0_36 = arith.constant 0 : index
    %48 = vector.load %arg10[%c0_35, %c0_36] : memref<8x32xf32, #tpu.memory_space<vmem>>, vector<8x32xf32>
    tpu.vector_store %arg10[%c0_35, %c0_36], %47 {strides = array<i32>} : memref<8x32xf32, #tpu.memory_space<vmem>>, vector<8x32xf32>,
    %c2_i32 = arith.constant 2 : i32
    %c8_i32_37 = arith.constant 8 : i32
    %49 = arith.muli %c2_i32, %c8_i32_37 : i32
    %50 = tpu.assume_multiple %49, 8 : i32
    %51 = arith.index_cast %50 : i32 to index
    %c0_38 = arith.constant 0 : index
    %52 = vector.load %arg11[%51, %c0_38] : memref<64x32xf32, #tpu.memory_space<vmem>>, vector<8x32xf32>
    %c0_39 = arith.constant 0 : index
    %c0_40 = arith.constant 0 : index
    %53 = vector.load %arg9[%c0_39, %c0_40] : memref<8x32xf32, #tpu.memory_space<vmem>>, vector<8x32xf32>
    %cst_41 = arith.constant dense<0.000000e+00> : vector<8x32xf32>
    %54 = tpu.matmul %53, %10, %cst_41 {dimension_numbers = #tpu.dot_dimension_numbers<[1], [0], [0], [1], [0, 0, 1, 1], [], []>} : vector<8x32xf32>, vector<32x32xf32>, vector<8x32xf32> -> vector<8x32xf32>
    %55 = arith.addf %52, %54 : vector<8x32xf32>
    %56 = math.tanh %55 : vector<8x32xf32>
    %c0_42 = arith.constant 0 : index
    %c0_43 = arith.constant 0 : index
    %57 = vector.load %arg9[%c0_42, %c0_43] : memref<8x32xf32, #tpu.memory_space<vmem>>, vector<8x32xf32>
    tpu.vector_store %arg9[%c0_42, %c0_43], %56 {strides = array<i32>} : memref<8x32xf32, #tpu.memory_space<vmem>>, vector<8x32xf32>,
    %58 = arith.addi %12, %c2_i32 : i32
    %c1_i32_44 = arith.constant 1 : i32
    %59 = arith.addi %58, %c1_i32_44 : i32
    %60 = vector.broadcast %59 : i32 to vector<8x1xi32>
    %61 = arith.cmpi eq, %11, %60 : vector<8x1xi32>
    %c0_45 = arith.constant 0 : index
    %c0_46 = arith.constant 0 : index
    %62 = vector.load %arg10[%c0_45, %c0_46] : memref<8x32xf32, #tpu.memory_space<vmem>>, vector<8x32xf32>
    %63 = vector.shape_cast %61 : vector<8x1xi1> to vector<8x1xi1>
    %64 = vector.broadcast %63 : vector<8x1xi1> to vector<8x32xi1>
    %65 = arith.select %64, %56, %62 : vector<8x32xi1>, vector<8x32xf32>
    %c0_47 = arith.constant 0 : index
    %c0_48 = arith.constant 0 : index
    %66 = vector.load %arg10[%c0_47, %c0_48] : memref<8x32xf32, #tpu.memory_space<vmem>>, vector<8x32xf32>
    tpu.vector_store %arg10[%c0_47, %c0_48], %65 {strides = array<i32>} : memref<8x32xf32, #tpu.memory_space<vmem>>, vector<8x32xf32>,
    %c3_i32 = arith.constant 3 : i32
    %c8_i32_49 = arith.constant 8 : i32
    %67 = arith.muli %c3_i32, %c8_i32_49 : i32
    %68 = tpu.assume_multiple %67, 8 : i32
    %69 = arith.index_cast %68 : i32 to index
    %c0_50 = arith.constant 0 : index
    %70 = vector.load %arg11[%69, %c0_50] : memref<64x32xf32, #tpu.memory_space<vmem>>, vector<8x32xf32>
    %c0_51 = arith.constant 0 : index
    %c0_52 = arith.constant 0 : index
    %71 = vector.load %arg9[%c0_51, %c0_52] : memref<8x32xf32, #tpu.memory_space<vmem>>, vector<8x32xf32>
    %cst_53 = arith.constant dense<0.000000e+00> : vector<8x32xf32>
    %72 = tpu.matmul %71, %10, %cst_53 {dimension_numbers = #tpu.dot_dimension_numbers<[1], [0], [0], [1], [0, 0, 1, 1], [], []>} : vector<8x32xf32>, vector<32x32xf32>, vector<8x32xf32> -> vector<8x32xf32>
    %73 = arith.addf %70, %72 : vector<8x32xf32>
    %74 = math.tanh %73 : vector<8x32xf32>
    %c0_54 = arith.constant 0 : index
    %c0_55 = arith.constant 0 : index
    %75 = vector.load %arg9[%c0_54, %c0_55] : memref<8x32xf32, #tpu.memory_space<vmem>>, vector<8x32xf32>
    tpu.vector_store %arg9[%c0_54, %c0_55], %74 {strides = array<i32>} : memref<8x32xf32, #tpu.memory_space<vmem>>, vector<8x32xf32>,
    %76 = arith.addi %12, %c3_i32 : i32
    %c1_i32_56 = arith.constant 1 : i32
    %77 = arith.addi %76, %c1_i32_56 : i32
    %78 = vector.broadcast %77 : i32 to vector<8x1xi32>
    %79 = arith.cmpi eq, %11, %78 : vector<8x1xi32>
    %c0_57 = arith.constant 0 : index
    %c0_58 = arith.constant 0 : index
    %80 = vector.load %arg10[%c0_57, %c0_58] : memref<8x32xf32, #tpu.memory_space<vmem>>, vector<8x32xf32>
    %81 = vector.shape_cast %79 : vector<8x1xi1> to vector<8x1xi1>
    %82 = vector.broadcast %81 : vector<8x1xi1> to vector<8x32xi1>
    %83 = arith.select %82, %74, %80 : vector<8x32xi1>, vector<8x32xf32>
    %c0_59 = arith.constant 0 : index
    %c0_60 = arith.constant 0 : index
    %84 = vector.load %arg10[%c0_59, %c0_60] : memref<8x32xf32, #tpu.memory_space<vmem>>, vector<8x32xf32>
    tpu.vector_store %arg10[%c0_59, %c0_60], %83 {strides = array<i32>} : memref<8x32xf32, #tpu.memory_space<vmem>>, vector<8x32xf32>,
    %c4_i32 = arith.constant 4 : i32
    %c8_i32_61 = arith.constant 8 : i32
    %85 = arith.muli %c4_i32, %c8_i32_61 : i32
    %86 = tpu.assume_multiple %85, 8 : i32
    %87 = arith.index_cast %86 : i32 to index
    %c0_62 = arith.constant 0 : index
    %88 = vector.load %arg11[%87, %c0_62] : memref<64x32xf32, #tpu.memory_space<vmem>>, vector<8x32xf32>
    %c0_63 = arith.constant 0 : index
    %c0_64 = arith.constant 0 : index
    %89 = vector.load %arg9[%c0_63, %c0_64] : memref<8x32xf32, #tpu.memory_space<vmem>>, vector<8x32xf32>
    %cst_65 = arith.constant dense<0.000000e+00> : vector<8x32xf32>
    %90 = tpu.matmul %89, %10, %cst_65 {dimension_numbers = #tpu.dot_dimension_numbers<[1], [0], [0], [1], [0, 0, 1, 1], [], []>} : vector<8x32xf32>, vector<32x32xf32>, vector<8x32xf32> -> vector<8x32xf32>
    %91 = arith.addf %88, %90 : vector<8x32xf32>
    %92 = math.tanh %91 : vector<8x32xf32>
    %c0_66 = arith.constant 0 : index
    %c0_67 = arith.constant 0 : index
    %93 = vector.load %arg9[%c0_66, %c0_67] : memref<8x32xf32, #tpu.memory_space<vmem>>, vector<8x32xf32>
    tpu.vector_store %arg9[%c0_66, %c0_67], %92 {strides = array<i32>} : memref<8x32xf32, #tpu.memory_space<vmem>>, vector<8x32xf32>,
    %94 = arith.addi %12, %c4_i32 : i32
    %c1_i32_68 = arith.constant 1 : i32
    %95 = arith.addi %94, %c1_i32_68 : i32
    %96 = vector.broadcast %95 : i32 to vector<8x1xi32>
    %97 = arith.cmpi eq, %11, %96 : vector<8x1xi32>
    %c0_69 = arith.constant 0 : index
    %c0_70 = arith.constant 0 : index
    %98 = vector.load %arg10[%c0_69, %c0_70] : memref<8x32xf32, #tpu.memory_space<vmem>>, vector<8x32xf32>
    %99 = vector.shape_cast %97 : vector<8x1xi1> to vector<8x1xi1>
    %100 = vector.broadcast %99 : vector<8x1xi1> to vector<8x32xi1>
    %101 = arith.select %100, %92, %98 : vector<8x32xi1>, vector<8x32xf32>
    %c0_71 = arith.constant 0 : index
    %c0_72 = arith.constant 0 : index
    %102 = vector.load %arg10[%c0_71, %c0_72] : memref<8x32xf32, #tpu.memory_space<vmem>>, vector<8x32xf32>
    tpu.vector_store %arg10[%c0_71, %c0_72], %101 {strides = array<i32>} : memref<8x32xf32, #tpu.memory_space<vmem>>, vector<8x32xf32>,
    %c5_i32 = arith.constant 5 : i32
    %c8_i32_73 = arith.constant 8 : i32
    %103 = arith.muli %c5_i32, %c8_i32_73 : i32
    %104 = tpu.assume_multiple %103, 8 : i32
    %105 = arith.index_cast %104 : i32 to index
    %c0_74 = arith.constant 0 : index
    %106 = vector.load %arg11[%105, %c0_74] : memref<64x32xf32, #tpu.memory_space<vmem>>, vector<8x32xf32>
    %c0_75 = arith.constant 0 : index
    %c0_76 = arith.constant 0 : index
    %107 = vector.load %arg9[%c0_75, %c0_76] : memref<8x32xf32, #tpu.memory_space<vmem>>, vector<8x32xf32>
    %cst_77 = arith.constant dense<0.000000e+00> : vector<8x32xf32>
    %108 = tpu.matmul %107, %10, %cst_77 {dimension_numbers = #tpu.dot_dimension_numbers<[1], [0], [0], [1], [0, 0, 1, 1], [], []>} : vector<8x32xf32>, vector<32x32xf32>, vector<8x32xf32> -> vector<8x32xf32>
    %109 = arith.addf %106, %108 : vector<8x32xf32>
    %110 = math.tanh %109 : vector<8x32xf32>
    %c0_78 = arith.constant 0 : index
    %c0_79 = arith.constant 0 : index
    %111 = vector.load %arg9[%c0_78, %c0_79] : memref<8x32xf32, #tpu.memory_space<vmem>>, vector<8x32xf32>
    tpu.vector_store %arg9[%c0_78, %c0_79], %110 {strides = array<i32>} : memref<8x32xf32, #tpu.memory_space<vmem>>, vector<8x32xf32>,
    %112 = arith.addi %12, %c5_i32 : i32
    %c1_i32_80 = arith.constant 1 : i32
    %113 = arith.addi %112, %c1_i32_80 : i32
    %114 = vector.broadcast %113 : i32 to vector<8x1xi32>
    %115 = arith.cmpi eq, %11, %114 : vector<8x1xi32>
    %c0_81 = arith.constant 0 : index
    %c0_82 = arith.constant 0 : index
    %116 = vector.load %arg10[%c0_81, %c0_82] : memref<8x32xf32, #tpu.memory_space<vmem>>, vector<8x32xf32>
    %117 = vector.shape_cast %115 : vector<8x1xi1> to vector<8x1xi1>
    %118 = vector.broadcast %117 : vector<8x1xi1> to vector<8x32xi1>
    %119 = arith.select %118, %110, %116 : vector<8x32xi1>, vector<8x32xf32>
    %c0_83 = arith.constant 0 : index
    %c0_84 = arith.constant 0 : index
    %120 = vector.load %arg10[%c0_83, %c0_84] : memref<8x32xf32, #tpu.memory_space<vmem>>, vector<8x32xf32>
    tpu.vector_store %arg10[%c0_83, %c0_84], %119 {strides = array<i32>} : memref<8x32xf32, #tpu.memory_space<vmem>>, vector<8x32xf32>,
    %c6_i32 = arith.constant 6 : i32
    %c8_i32_85 = arith.constant 8 : i32
    %121 = arith.muli %c6_i32, %c8_i32_85 : i32
    %122 = tpu.assume_multiple %121, 8 : i32
    %123 = arith.index_cast %122 : i32 to index
    %c0_86 = arith.constant 0 : index
    %124 = vector.load %arg11[%123, %c0_86] : memref<64x32xf32, #tpu.memory_space<vmem>>, vector<8x32xf32>
    %c0_87 = arith.constant 0 : index
    %c0_88 = arith.constant 0 : index
    %125 = vector.load %arg9[%c0_87, %c0_88] : memref<8x32xf32, #tpu.memory_space<vmem>>, vector<8x32xf32>
    %cst_89 = arith.constant dense<0.000000e+00> : vector<8x32xf32>
    %126 = tpu.matmul %125, %10, %cst_89 {dimension_numbers = #tpu.dot_dimension_numbers<[1], [0], [0], [1], [0, 0, 1, 1], [], []>} : vector<8x32xf32>, vector<32x32xf32>, vector<8x32xf32> -> vector<8x32xf32>
    %127 = arith.addf %124, %126 : vector<8x32xf32>
    %128 = math.tanh %127 : vector<8x32xf32>
    %c0_90 = arith.constant 0 : index
    %c0_91 = arith.constant 0 : index
    %129 = vector.load %arg9[%c0_90, %c0_91] : memref<8x32xf32, #tpu.memory_space<vmem>>, vector<8x32xf32>
    tpu.vector_store %arg9[%c0_90, %c0_91], %128 {strides = array<i32>} : memref<8x32xf32, #tpu.memory_space<vmem>>, vector<8x32xf32>,
    %130 = arith.addi %12, %c6_i32 : i32
    %c1_i32_92 = arith.constant 1 : i32
    %131 = arith.addi %130, %c1_i32_92 : i32
    %132 = vector.broadcast %131 : i32 to vector<8x1xi32>
    %133 = arith.cmpi eq, %11, %132 : vector<8x1xi32>
    %c0_93 = arith.constant 0 : index
    %c0_94 = arith.constant 0 : index
    %134 = vector.load %arg10[%c0_93, %c0_94] : memref<8x32xf32, #tpu.memory_space<vmem>>, vector<8x32xf32>
    %135 = vector.shape_cast %133 : vector<8x1xi1> to vector<8x1xi1>
    %136 = vector.broadcast %135 : vector<8x1xi1> to vector<8x32xi1>
    %137 = arith.select %136, %128, %134 : vector<8x32xi1>, vector<8x32xf32>
    %c0_95 = arith.constant 0 : index
    %c0_96 = arith.constant 0 : index
    %138 = vector.load %arg10[%c0_95, %c0_96] : memref<8x32xf32, #tpu.memory_space<vmem>>, vector<8x32xf32>
    tpu.vector_store %arg10[%c0_95, %c0_96], %137 {strides = array<i32>} : memref<8x32xf32, #tpu.memory_space<vmem>>, vector<8x32xf32>,
    %c7_i32 = arith.constant 7 : i32
    %c8_i32_97 = arith.constant 8 : i32
    %139 = arith.muli %c7_i32, %c8_i32_97 : i32
    %140 = tpu.assume_multiple %139, 8 : i32
    %141 = arith.index_cast %140 : i32 to index
    %c0_98 = arith.constant 0 : index
    %142 = vector.load %arg11[%141, %c0_98] : memref<64x32xf32, #tpu.memory_space<vmem>>, vector<8x32xf32>
    %c0_99 = arith.constant 0 : index
    %c0_100 = arith.constant 0 : index
    %143 = vector.load %arg9[%c0_99, %c0_100] : memref<8x32xf32, #tpu.memory_space<vmem>>, vector<8x32xf32>
    %cst_101 = arith.constant dense<0.000000e+00> : vector<8x32xf32>
    %144 = tpu.matmul %143, %10, %cst_101 {dimension_numbers = #tpu.dot_dimension_numbers<[1], [0], [0], [1], [0, 0, 1, 1], [], []>} : vector<8x32xf32>, vector<32x32xf32>, vector<8x32xf32> -> vector<8x32xf32>
    %145 = arith.addf %142, %144 : vector<8x32xf32>
    %146 = math.tanh %145 : vector<8x32xf32>
    %c0_102 = arith.constant 0 : index
    %c0_103 = arith.constant 0 : index
    %147 = vector.load %arg9[%c0_102, %c0_103] : memref<8x32xf32, #tpu.memory_space<vmem>>, vector<8x32xf32>
    tpu.vector_store %arg9[%c0_102, %c0_103], %146 {strides = array<i32>} : memref<8x32xf32, #tpu.memory_space<vmem>>, vector<8x32xf32>,
    %148 = arith.addi %12, %c7_i32 : i32
    %c1_i32_104 = arith.constant 1 : i32
    %149 = arith.addi %148, %c1_i32_104 : i32
    %150 = vector.broadcast %149 : i32 to vector<8x1xi32>
    %151 = arith.cmpi eq, %11, %150 : vector<8x1xi32>
    %c0_105 = arith.constant 0 : index
    %c0_106 = arith.constant 0 : index
    %152 = vector.load %arg10[%c0_105, %c0_106] : memref<8x32xf32, #tpu.memory_space<vmem>>, vector<8x32xf32>
    %153 = vector.shape_cast %151 : vector<8x1xi1> to vector<8x1xi1>
    %154 = vector.broadcast %153 : vector<8x1xi1> to vector<8x32xi1>
    %155 = arith.select %154, %146, %152 : vector<8x32xi1>, vector<8x32xf32>
    %c0_107 = arith.constant 0 : index
    %c0_108 = arith.constant 0 : index
    %156 = vector.load %arg10[%c0_107, %c0_108] : memref<8x32xf32, #tpu.memory_space<vmem>>, vector<8x32xf32>
    tpu.vector_store %arg10[%c0_107, %c0_108], %155 {strides = array<i32>} : memref<8x32xf32, #tpu.memory_space<vmem>>, vector<8x32xf32>,
    %c8_i32_109 = arith.constant 8 : i32
    %c0_i32_110 = arith.constant 0 : i32
    %157 = arith.cmpi eq, %arg0, %c0_i32_110 : i32
    %158 = arith.extui %157 : i1 to i32
    %c0_i32_111 = arith.constant 0 : i32
    %159 = arith.cmpi ne, %158, %c0_i32_111 : i32
    scf.if %159 {
      %c0_112 = arith.constant 0 : index
      %c0_113 = arith.constant 0 : index
      %160 = vector.load %arg10[%c0_112, %c0_113] : memref<8x32xf32, #tpu.memory_space<vmem>>, vector<8x32xf32>
      %c0_114 = arith.constant 0 : index
      %c0_115 = arith.constant 0 : index
      %161 = vector.load %arg6[%c0_114, %c0_115] : memref<1x32xf32, #tpu.memory_space<vmem>>, vector<1x32xf32>
      %162 = vector.broadcast %161 : vector<1x32xf32> to vector<8x32xf32>
      %163 = arith.mulf %160, %162 : vector<8x32xf32>
      %cst_116 = arith.constant dense<0.000000e+00> : vector<8xf32>
      %164 = vector.multi_reduction <add>, %163, %cst_116 [1] : vector<8x32xf32> to vector<8xf32>
      %165 = vector.shape_cast %164 : vector<8xf32> to vector<8x1xf32>
      %c0_117 = arith.constant 0 : index
      %c0_118 = arith.constant 0 : index
      %166 = vector.load %arg7[%c0_117, %c0_118] : memref<1x1xf32, #tpu.memory_space<vmem>>, vector<1x1xf32>
      %167 = vector.broadcast %166 : vector<1x1xf32> to vector<8x1xf32>
      %168 = arith.addf %165, %167 : vector<8x1xf32>
      %c0_119 = arith.constant 0 : index
      %c0_120 = arith.constant 0 : index
      %169 = vector.load %arg8[%c0_119, %c0_120] : memref<8x1xf32, #tpu.memory_space<vmem>>, vector<8x1xf32>
      tpu.vector_store %arg8[%c0_119, %c0_120], %168 {strides = array<i32>} : memref<8x1xf32, #tpu.memory_space<vmem>>, vector<8x1xf32>,
    } else {
    }
    return
  }
  func.func @transform_0(%arg0: i32) -> (i32, i32) {
    %c0_i32 = arith.constant 0 : i32
    %c0_i32_0 = arith.constant 0 : i32
    return %arg0, %c0_i32 : i32, i32
  }
  func.func @transform_1(%arg0: i32) -> (i32, i32) {
    %c0_i32 = arith.constant 0 : i32
    %c0_i32_0 = arith.constant 0 : i32
    %c0_i32_1 = arith.constant 0 : i32
    return %c0_i32, %c0_i32_0 : i32, i32
  }
  func.func @transform_2(%arg0: i32) -> (i32, i32) {
    %c0_i32 = arith.constant 0 : i32
    %c0_i32_0 = arith.constant 0 : i32
    %c0_i32_1 = arith.constant 0 : i32
    return %c0_i32, %c0_i32_0 : i32, i32
  }
  func.func @transform_3(%arg0: i32) -> (i32, i32) {
    %c0_i32 = arith.constant 0 : i32
    %c0_i32_0 = arith.constant 0 : i32
    %c0_i32_1 = arith.constant 0 : i32
    return %c0_i32, %c0_i32_0 : i32, i32
  }
  func.func @transform_4(%arg0: i32) -> (i32, i32) {
    %c0_i32 = arith.constant 0 : i32
    %c0_i32_0 = arith.constant 0 : i32
    %c0_i32_1 = arith.constant 0 : i32
    return %c0_i32, %c0_i32_0 : i32, i32
  }
  func.func @transform_5(%arg0: i32) -> (i32, i32) {
    %c0_i32 = arith.constant 0 : i32
    %c0_i32_0 = arith.constant 0 : i32
    %c0_i32_1 = arith.constant 0 : i32
    return %c0_i32, %c0_i32_0 : i32, i32
  }
  func.func @transform_6(%arg0: i32) -> (i32, i32) {
    %c0_i32 = arith.constant 0 : i32
    %c0_i32_0 = arith.constant 0 : i32
    %c0_i32_1 = arith.constant 0 : i32
    return %c0_i32, %c0_i32_0 : i32, i32
  }
  func.func @transform_7(%arg0: i32) -> (i32, i32) {
    %c0_i32 = arith.constant 0 : i32
    %c0_i32_0 = arith.constant 0 : i32
    %c0_i32_1 = arith.constant 0 : i32
    return %c0_i32, %c0_i32_0 : i32, i32
  }
}

</mosaic_0001>

<bundles_post_ra>
// kernel: minibatch_rnn1.1
= control target key start
LH: loop header
LB: loop body
LE: loop exit
PB: predicated region body
PF: predicated region fallthrough
CT: control target
= control target key end

     0   :  { %vm52_vm0 = vcmask 130048   ;;  %v1192_v3 = vmov 0.0|0.0   ;;  %vm1193_vm1 = vmmov 0   ;;  %v1194_v4 = vmov 0.0   ;;  %s1420_s2 = inlined_call_operand.vmem [shape: f32[16,32], index: 2, kind: input, shape index: {}]   ;;  %s1421_s0 = inlined_call_operand.vmem [shape: f32[64,16], index: 0, kind: input, shape index: {}]   ;;  %s1422_s3 = inlined_call_operand.vmem [shape: f32[32,32], index: 3, kind: input, shape index: {}]   ;;  %s1423_s1 = inlined_call_operand.vmem [shape: s32[8,1], index: 1, kind: input, shape index: {}]   ;;  %s1424_s4 = inlined_call_operand.vmem [shape: f32[1,32], index: 4, kind: input, shape index: {}]   ;;  %s1425_s6 = inlined_call_operand.<no memory space> [shape: f32[1,1], index: 6, kind: input, shape index: {}]   ;;  %s1426_s5 = inlined_call_operand.vmem [shape: f32[1,32], index: 5, kind: input, shape index: {}]   ;;  %s1427_s7 = inlined_call_operand.vmem [shape: f32[8,1], index: 7, kind: output, shape index: {}]  }
   0x1   :  { %v43_v0 = vld [vmem:[%s1420_s2] sm:$0xff]  ;;  %v44_v1 = vld [vmem:[%s1420_s2 + $0x8] sm:$0xff]  ;;  %1122 = vmatprep.subr.bf16.mxu1 %v1192_v3  ;;  %1038 = vmatprep.mubr.msk.f32.mxu1 %vm1193_vm1, %v1194_v4  ;;  %vm32_vm2 = vcmask 261120   ;;  %v1195_v8 = vmov 0   ;;  %v193_v10 = vld [vmem:[%s1422_s3 + $0x10] sm:$0xff] }
   0x2   :  { %v35_v2 = vld [vmem:[%s1421_s0] sm:$0xff]  ;;  %v1118_v5 = vpack.c.bf16 %v44_v1, %v43_v0  ;;  %v192_v7 = vld [vmem:[%s1422_s3 + $0x8] sm:$0xff]  ;;  %33 = vst.msk [vmem:[#allocation2] sm:$0xff] %vm32_vm2, %v1194_v4  ;;  %34 = vst.msk [vmem:[#allocation3] sm:$0xff] %vm32_vm2, %v1194_v4  ;;  %1174 = vset.pattern.permute.xlu0 %v1195_v8  ;;  %1175 = vset.pattern.permute.xlu1 %v1195_v8 }
   0x3   :  { %1018 = vmatprep.mubr.msk.f32.mxu0 %vm52_vm0, %v35_v2  ;;  %v191_v6 = vld [vmem:[%s1422_s3] sm:$0xff]  ;;  %v194_v11 = vld [vmem:[%s1422_s3 + $0x18] sm:$0xff]  ;;  %v36_v13 = vld [vmem:[%s1421_s0 + $0x8] sm:$0xff] }
   0x4   :  { %v1260_v9 = vpack.c.bf16 %v192_v7, %v191_v6  ;;  %v1271_v12 = vld [vmem:[%s1423_s1] sm:$0xff]  ;;  %1119 = vmatprep.subr.bf16.mxu0 %v1118_v5  ;;  %v1279_v14 = vpack.c.bf16 %v194_v11, %v193_v10  ;;  %v37_v32 = vld [vmem:[%s1421_s0 + $0x10] sm:$0xff]  ;;  %v38_v33 = vld [vmem:[%s1421_s0 + $0x18] sm:$0xff] }
   0x5   :  { %vm277_vm3 = vcmp.eq.s32.totalorder %v1271_v12, 1  ;;  %1121 = vmatpush3.bf16.msra.mxu0 %v1118_v5  ;;  %vm367_vm4 = vcmp.eq.s32.totalorder %v1271_v12, 2  ;;  %v1303_v18 = vld [vmem:[%s1424_s4] ss:$0 sm:$0xff]  ;;  %v40_v35 = vld [vmem:[%s1421_s0 + $0x28] sm:$0xff]  ;;  %v41_v36 = vld [vmem:[%s1421_s0 + $0x30] sm:$0xff] }
   0x6   :  { %1124 = vmatpush3.bf16.msra.mxu1 %v1260_v9  ;;  %v279_v15 = vsel %vm277_vm3, 1, %v1195_v8  ;;  %1134 = vmatprep.subr.bf16.mxu0 %v1192_v3  ;;  %v369_v17 = vsel %vm367_vm4, 1, %v1195_v8  ;;  %v39_v34 = vld [vmem:[%s1421_s0 + $0x20] sm:$0xff]  ;;  %v42_v37 = vld [vmem:[%s1421_s0 + $0x38] sm:$0xff]  ;;  %vm457_vm6 = vcmp.eq.s32.totalorder %v1271_v12, 3  ;;  %vm547_vm8 = vcmp.eq.s32.totalorder %v1271_v12, 4 }
   0x7   :  { %1125 = vmatprep.subr.bf16.mxu1 %v1192_v3  ;;  %281 = vperm.xlu0 %1174, %v279_v15   ;;  %v459_v38 = vsel %vm457_vm6, 1, %v1195_v8  ;;  %v549_v60 = vsel %vm547_vm8, 1, %v1195_v8  ;;  %vm637_vm10 = vcmp.eq.s32.totalorder %v1271_v12, 5  ;;  %vm727_vm12 = vcmp.eq.s32.totalorder %v1271_v12, 6 }
   0x8   :  { %1019 = vmatmul.mubr.msk.f32.vlgmr.msra.gmra.mrb[0].mxu0 %vm52_vm0, %v36_v13  ;;  %461 = vperm.xlu1 %1175, %v459_v38   ;;  %v639_v10 = vsel %vm637_vm10, 1, %v1195_v8  ;;  %vm817_vm14 = vcmp.eq.s32.totalorder %v1271_v12, 7  ;;  %vm939_vm4 = vcmask 7168  }
   0x9   :  { %v198_v16 = vld [vmem:[#allocation2] sm:$0xff]  ;;  %1136 = vmatpush3.bf16.msra.mxu0 %v1260_v9  ;;  %v278_v28 = vld [vmem:[#allocation3] sm:$0xff]  ;;  %1021 = vmatprep.mubr.msk.f32.mxu0 %vm52_vm0, %v37_v32  ;;  %v819_v32 = vsel %vm817_vm14, 1, %v1195_v8 }
   0xa   :  { %1127 = vmatpush3.bf16.msra.mxu1 %v1279_v14  ;;  %1137 = vmatprep.subr.bf16.mxu0 %v1192_v3 }
   0xb   :  { %1128 = vmatprep.subr.bf16.mxu1 %v1192_v3  ;;  %371 = vperm.xlu0 %1174, %v369_v17  }
   0xc   :  { %1022 = vmatmul.mubr.msk.f32.gmra.mrb[2].mxu0 %vm52_vm0, %v38_v33  ;;  %551 = vperm.xlu1 %1175, %v549_v60  }
   0xd   :  { %1039 = vmatmul.mubr.msk.f32.vlgmr.msra.gmra.mrb[0].mxu1 %vm32_vm2, %v198_v16  ;;  %1139 = vmatpush3.bf16.msra.mxu0 %v1279_v14 }
   0xe   :  { %1130 = vmatpush3.bf16.msra.mxu1 %v1260_v9  ;;  %1049 = vmatprep.mubr.msk.f32.mxu1 %vm1193_vm1, %v1194_v4 }
   0xf   :  { %1131 = vmatprep.subr.bf16.mxu1 %v1192_v3  ;;  %1146 = vmatprep.subr.bf16.mxu0 %v1192_v3 }
  0x10   :  { %1024 = vmatprep.mubr.msk.f32.mxu0 %vm52_vm0, %v39_v34  ;;  %641 = vperm.xlu0 %1174, %v639_v10  }
  0x11   :  { %1025 = vmatmul.mubr.msk.f32.gmra.mrb[4].mxu0 %vm52_vm0, %v40_v35 }
  0x12   :  { %1133 = vmatpush3.bf16.msra.mxu1 %v1279_v14  ;;  %1027 = vmatprep.mubr.msk.f32.mxu0 %vm52_vm0, %v41_v36 }
  0x13   :  { %1140 = vmatprep.subr.bf16.mxu1 %v1192_v3 }
  0x14   :  { %821 = vperm.xlu0 %1174, %v819_v32  }
  0x15   :  { %1028 = vmatmul.mubr.msk.f32.gmra.mrb[6].mxu0 %vm52_vm0, %v42_v37  ;;  %vm907_vm0 = vcmp.eq.s32.totalorder %v1271_v12, 8 }
  0x16   :  { %1060 = vmatprep.mubr.msk.f32.mxu0 %vm1193_vm1, %v1194_v4 }
  0x86   :  { %v282_v27 = vpop.permute.xlu0 %281 }
  0x87   :  { %vm283_vm5 = vcmp.eq.s32.totalorder %v282_v27, 1  ;;  %v462_v1 = vpop.permute.xlu1 %461 }
  0x88   :  { %vm463_vm9 = vcmp.eq.s32.totalorder %v462_v1, 1 }
  0x8a   :  { %v372_v43 = vpop.permute.xlu0 %371 }
  0x8b   :  { %vm373_vm7 = vcmp.eq.s32.totalorder %v372_v43, 1  ;;  %v552_v17 = vpop.permute.xlu1 %551 }
  0x8c   :  { %vm553_vm11 = vcmp.eq.s32.totalorder %v552_v17, 1 }
  0x8f   :  { %v642_v27 = vpop.permute.xlu0 %641 }
  0x90   :  { %vm643_vm13 = vcmp.eq.s32.totalorder %v642_v27, 1 }
  0x93   :  { %v822_v43 = vpop.permute.xlu0 %821 }
  0xdb   :  { %v1020_v19 = vpop.f32.mrb[0].mxu0 }
  0xdc   :  { %v149_v20 = vadd.f32 %v1020_v19, %v1303_v18  ;;  %v143_v21 = vpop.f32.mrb[1].mxu0 }
  0xdd   :  { %v144_v22 = vadd.f32 %v1303_v18, %v143_v21 }
  0xde   :  { %184 = vst.msk [vmem:[#allocation4 + $0x8] sm:$0xff] %vm32_vm2, %v149_v20 }
  0xdf   :  { %183 = vst.msk [vmem:[#allocation4] sm:$0xff] %vm32_vm2, %v144_v22  ;;  %v1023_v48 = vpop.f32.mrb[2].mxu0  ;;  %v729_v22 = vsel %vm727_vm12, 1, %v1195_v8 }
  0xe0   :  { %v268_v23 = vpop.f32.mrb[0].mxu1  ;;  %v159_v49 = vadd.f32 %v1023_v48, %v1303_v18  ;;  %v153_v50 = vpop.f32.mrb[3].mxu0  ;;  %731 = vperm.xlu1 %1175, %v729_v22  }
  0xe1   :  { %v1040_v24 = vpop.f32.mrb[1].mxu1  ;;  %v154_v51 = vadd.f32 %v1303_v18, %v153_v50 }
  0xe2   :  { %186 = vst.msk [vmem:[#allocation4 + $0x18] sm:$0xff] %vm32_vm2, %v159_v49 }
  0xe3   :  { %185 = vst.msk [vmem:[#allocation4 + $0x10] sm:$0xff] %vm32_vm2, %v154_v51 }
  0xe4   :  { %v1026_v52 = vpop.f32.mrb[4].mxu0 }
  0xe5   :  { %v287_v39 = vld [vmem:[#allocation4 + $0x8] sm:$0xff]  ;;  %v169_v53 = vadd.f32 %v1026_v52, %v1303_v18  ;;  %v163_v54 = vpop.f32.mrb[5].mxu0 }
  0xe6   :  { %v197_v25 = vld [vmem:[#allocation4] sm:$0xff]  ;;  %v164_v55 = vadd.f32 %v1303_v18, %v163_v54 }
  0xe7   :  { %v272_v26 = vadd.f32 %v268_v23, %v197_v25  ;;  %188 = vst.msk [vmem:[#allocation4 + $0x28] sm:$0xff] %vm32_vm2, %v169_v53 }
  0xe8   :  { %187 = vst.msk [vmem:[#allocation4 + $0x20] sm:$0xff] %vm32_vm2, %v164_v55  ;;  %v1029_v56 = vpop.f32.mrb[6].mxu0  ;;  %v962_v55 = vld [vmem:[%s1426_s5] ss:$0 sm:$0xff] }
  0xe9   :  { %1176 = vtanh.f32 %v272_v26  ;;  %v179_v57 = vadd.f32 %v1029_v56, %v1303_v18  ;;  %v173_v58 = vpop.f32.mrb[7].mxu0  ;;  %v467_v11 = vld [vmem:[#allocation4 + $0x18] sm:$0xff] }
  0xea   :  { %v174_v59 = vadd.f32 %v1303_v18, %v173_v58  ;;  %v377_v61 = vld [vmem:[#allocation4 + $0x10] sm:$0xff] }
  0xeb   :  { %190 = vst.msk [vmem:[#allocation4 + $0x38] sm:$0xff] %vm32_vm2, %v179_v57 }
  0xec   :  { %189 = vst.msk [vmem:[#allocation4 + $0x30] sm:$0xff] %vm32_vm2, %v174_v59 }
  0xee   :  { %v647_v33 = vld [vmem:[#allocation4 + $0x28] sm:$0xff] }
  0xef   :  { %v557_v23 = vld [vmem:[#allocation4 + $0x20] sm:$0xff] }
  0xf2   :  { %v827_v12 = vld [vmem:[#allocation4 + $0x38] sm:$0xff] }
  0xf3   :  { %v1177_v29 = vpop.eup %1176 }
  0xf4   :  { %274 = vst.msk [vmem:[#allocation2] sm:$0xff] %vm32_vm2, %v1177_v29  ;;  %v284_v30 = vsel %vm283_vm5, %v1177_v29, %v278_v28 }
  0xf5   :  { %285 = vst.msk [vmem:[#allocation3] sm:$0xff] %vm32_vm2, %v284_v30 }
  0xfb   :  { %v288_v31 = vld [vmem:[#allocation2] sm:$0xff] }
  0xfc   :  { %1050 = vmatmul.mubr.msk.f32.vlgmr.msra.gmra.mrb[2].mxu1 %vm32_vm2, %v288_v31  ;;  %v368_v45 = vld [vmem:[#allocation3] sm:$0xff] }
  0xfd   :  { %1142 = vmatpush3.bf16.msra.mxu1 %v1260_v9  ;;  %1071 = vmatprep.mubr.msk.f32.mxu1 %vm1193_vm1, %v1194_v4 }
  0xfe   :  { %1143 = vmatprep.subr.bf16.mxu1 %v1192_v3 }
 0x101   :  { %1145 = vmatpush3.bf16.msra.mxu1 %v1279_v14 }
 0x102   :  { %1152 = vmatprep.subr.bf16.mxu1 %v1192_v3 }
 0x15f   :  { %v732_v37 = vpop.permute.xlu1 %731 }
 0x160   :  { %vm733_vm15 = vcmp.eq.s32.totalorder %v732_v37, 1 }
 0x1cf   :  { %v358_v40 = vpop.f32.mrb[2].mxu1 }
 0x1d0   :  { %v362_v41 = vadd.f32 %v358_v40, %v287_v39  ;;  %v1051_v42 = vpop.f32.mrb[3].mxu1  ;;  %v737_v39 = vld [vmem:[#allocation4 + $0x30] sm:$0xff] }
 0x1d2   :  { %1178 = vtanh.f32 %v362_v41 }
 0x1dc   :  { %v1179_v44 = vpop.eup %1178 }
 0x1dd   :  { %364 = vst.msk [vmem:[#allocation2] sm:$0xff] %vm32_vm2, %v1179_v44  ;;  %v374_v46 = vsel %vm373_vm7, %v1179_v44, %v368_v45 }
 0x1de   :  { %375 = vst.msk [vmem:[#allocation3] sm:$0xff] %vm32_vm2, %v374_v46 }
 0x1e4   :  { %v378_v47 = vld [vmem:[#allocation2] sm:$0xff] }
 0x1e5   :  { %1061 = vmatmul.mubr.msk.f32.vlgmr.msra.gmra.mrb[8].mxu0 %vm32_vm2, %v378_v47  ;;  %v458_v5 = vld [vmem:[#allocation3] sm:$0xff] }
 0x1e6   :  { %1148 = vmatpush3.bf16.msra.mxu0 %v1260_v9  ;;  %1082 = vmatprep.mubr.msk.f32.mxu0 %vm1193_vm1, %v1194_v4 }
 0x1e7   :  { %1149 = vmatprep.subr.bf16.mxu0 %v1192_v3 }
 0x1ea   :  { %1151 = vmatpush3.bf16.msra.mxu0 %v1279_v14 }
 0x1eb   :  { %1158 = vmatprep.subr.bf16.mxu0 %v1192_v3 }
 0x2b8   :  { %v448_v62 = vpop.f32.mrb[8].mxu0 }
 0x2b9   :  { %v452_v63 = vadd.f32 %v448_v62, %v377_v61  ;;  %v1062_v0 = vpop.f32.mrb[9].mxu0 }
 0x2bb   :  { %1180 = vtanh.f32 %v452_v63 }
 0x2c5   :  { %v1181_v2 = vpop.eup %1180 }
 0x2c6   :  { %454 = vst.msk [vmem:[#allocation2] sm:$0xff] %vm32_vm2, %v1181_v2  ;;  %v464_v6 = vsel %vm463_vm9, %v1181_v2, %v458_v5 }
 0x2c7   :  { %465 = vst.msk [vmem:[#allocation3] sm:$0xff] %vm32_vm2, %v464_v6 }
 0x2cd   :  { %v468_v7 = vld [vmem:[#allocation2] sm:$0xff] }
 0x2ce   :  { %1072 = vmatmul.mubr.msk.f32.vlgmr.msra.gmra.mrb[4].mxu1 %vm32_vm2, %v468_v7  ;;  %v548_v19 = vld [vmem:[#allocation3] sm:$0xff] }
 0x2cf   :  { %1154 = vmatpush3.bf16.msra.mxu1 %v1260_v9  ;;  %1093 = vmatprep.mubr.msk.f32.mxu1 %vm1193_vm1, %v1194_v4 }
 0x2d0   :  { %1155 = vmatprep.subr.bf16.mxu1 %v1192_v3 }
 0x2d3   :  { %1157 = vmatpush3.bf16.msra.mxu1 %v1279_v14 }
 0x2d4   :  { %1164 = vmatprep.subr.bf16.mxu1 %v1192_v3 }
 0x3a1   :  { %v538_v13 = vpop.f32.mrb[4].mxu1 }
 0x3a2   :  { %v542_v15 = vadd.f32 %v538_v13, %v467_v11  ;;  %v1073_v16 = vpop.f32.mrb[5].mxu1 }
 0x3a4   :  { %1182 = vtanh.f32 %v542_v15 }
 0x3ae   :  { %v1183_v18 = vpop.eup %1182 }
 0x3af   :  { %544 = vst.msk [vmem:[#allocation2] sm:$0xff] %vm32_vm2, %v1183_v18  ;;  %v554_v20 = vsel %vm553_vm11, %v1183_v18, %v548_v19 }
 0x3b0   :  { %555 = vst.msk [vmem:[#allocation3] sm:$0xff] %vm32_vm2, %v554_v20 }
 0x3b6   :  { %v558_v21 = vld [vmem:[#allocation2] sm:$0xff] }
 0x3b7   :  { %1083 = vmatmul.mubr.msk.f32.vlgmr.msra.gmra.mrb[10].mxu0 %vm32_vm2, %v558_v21  ;;  %v638_v29 = vld [vmem:[#allocation3] sm:$0xff] }
 0x3b8   :  { %1160 = vmatpush3.bf16.msra.mxu0 %v1260_v9  ;;  %1104 = vmatprep.mubr.msk.f32.mxu0 %vm1193_vm1, %v1194_v4 }
 0x3b9   :  { %1161 = vmatprep.subr.bf16.mxu0 %v1192_v3 }
 0x3bc   :  { %1163 = vmatpush3.bf16.msra.mxu0 %v1279_v14 }
 0x48a   :  { %v628_v24 = vpop.f32.mrb[10].mxu0 }
 0x48b   :  { %v632_v25 = vadd.f32 %v628_v24, %v557_v23  ;;  %v1084_v26 = vpop.f32.mrb[11].mxu0 }
 0x48d   :  { %1184 = vtanh.f32 %v632_v25 }
 0x497   :  { %v1185_v28 = vpop.eup %1184 }
 0x498   :  { %634 = vst.msk [vmem:[#allocation2] sm:$0xff] %vm32_vm2, %v1185_v28  ;;  %v644_v30 = vsel %vm643_vm13, %v1185_v28, %v638_v29 }
 0x499   :  { %645 = vst.msk [vmem:[#allocation3] sm:$0xff] %vm32_vm2, %v644_v30 }
 0x49f   :  { %v648_v31 = vld [vmem:[#allocation2] sm:$0xff] }
 0x4a0   :  { %1094 = vmatmul.mubr.msk.f32.vlgmr.msra.gmra.mrb[6].mxu1 %vm32_vm2, %v648_v31  ;;  %v728_v38 = vld [vmem:[#allocation3] sm:$0xff] }
 0x4a1   :  { %1166 = vmatpush3.bf16.msra.mxu1 %v1260_v9  ;;  %1115 = vmatprep.mubr.msk.f32.mxu1 %vm1193_vm1, %v1194_v4  ;;  %vm823_vm1 = vcmp.eq.s32.totalorder %v822_v43, 1 }
 0x4a2   :  { %1167 = vmatprep.subr.bf16.mxu1 %v1192_v3 }
 0x4a5   :  { %1169 = vmatpush3.bf16.msra.mxu1 %v1279_v14  ;;  %v909_v14 = vsel %vm907_vm0, 1, %v1195_v8  ;;  %v12_v8 = vstv %s1425_s6 }
 0x4a6   :  { %911 = vperm.xlu1 %1175, %v909_v14   ;;  %13 = vst [vmem:[#allocation5] sm:$0x1] %v12_v8 }
 0x4ad   :  { %v963_v59 = vld [vmem:[#allocation5] ss:$0 sm:$0xff] }
 0x525   :  { %v912_v51 = vpop.permute.xlu1 %911 }
 0x526   :  { %vm913_vm3 = vcmp.eq.s32.totalorder %v912_v51, 1 }
 0x573   :  { %v718_v34 = vpop.f32.mrb[6].mxu1 }
 0x574   :  { %v722_v35 = vadd.f32 %v718_v34, %v647_v33  ;;  %v1095_v36 = vpop.f32.mrb[7].mxu1 }
 0x576   :  { %1186 = vtanh.f32 %v722_v35 }
 0x580   :  { %v1187_v9 = vpop.eup %1186 }
 0x581   :  { %724 = vst.msk [vmem:[#allocation2] sm:$0xff] %vm32_vm2, %v1187_v9  ;;  %v734_v4 = vsel %vm733_vm15, %v1187_v9, %v728_v38 }
 0x582   :  { %735 = vst.msk [vmem:[#allocation3] sm:$0xff] %vm32_vm2, %v734_v4 }
 0x588   :  { %v738_v3 = vld [vmem:[#allocation2] sm:$0xff] }
 0x589   :  { %1105 = vmatmul.mubr.msk.f32.vlgmr.msra.gmra.mrb[12].mxu0 %vm32_vm2, %v738_v3  ;;  %v818_v45 = vld [vmem:[#allocation3] sm:$0xff] }
 0x65c   :  { %v808_v40 = vpop.f32.mrb[12].mxu0 }
 0x65d   :  { %v812_v41 = vadd.f32 %v808_v40, %v737_v39  ;;  %v1106_v42 = vpop.f32.mrb[13].mxu0 }
 0x65f   :  { %1188 = vtanh.f32 %v812_v41 }
 0x669   :  { %v1189_v44 = vpop.eup %1188 }
 0x66a   :  { %814 = vst.msk [vmem:[#allocation2] sm:$0xff] %vm32_vm2, %v1189_v44  ;;  %v824_v46 = vsel %vm823_vm1, %v1189_v44, %v818_v45 }
 0x66b   :  { %825 = vst.msk [vmem:[#allocation3] sm:$0xff] %vm32_vm2, %v824_v46 }
 0x671   :  { %v828_v47 = vld [vmem:[#allocation2] sm:$0xff] }
 0x672   :  { %1116 = vmatmul.mubr.msk.f32.vlgmr.msra.gmra.mrb[8].mxu1 %vm32_vm2, %v828_v47  ;;  %v908_v53 = vld [vmem:[#allocation3] sm:$0xff] }
 0x745   :  { %v898_v48 = vpop.f32.mrb[8].mxu1 }
 0x746   :  { %v902_v49 = vadd.f32 %v898_v48, %v827_v12  ;;  %v1117_v50 = vpop.f32.mrb[9].mxu1 }
 0x748   :  { %1190 = vtanh.f32 %v902_v49 }
 0x752   :  { %v1191_v52 = vpop.eup %1190 }
 0x753   :  { %904 = vst.msk [vmem:[#allocation2] sm:$0xff] %vm32_vm2, %v1191_v52  ;;  %v914_v54 = vsel %vm913_vm3, %v1191_v52, %v908_v53 }
 0x754   :  { %915 = vst.msk [vmem:[#allocation3] sm:$0xff] %vm32_vm2, %v914_v54 }
 0x75b   :  { %v919_v56 = vld [vmem:[#allocation3] sm:$0xff] }
 0x75c   :  { %v927_v57 = vmul.f32 %v962_v55, %v919_v56 }
 0x75e   :  { %v928_v58 = vsel %vm32_vm2, %v927_v57, 0.0 }
 0x75f   :  { %929 = vadd.xlane.f32.xlu0 %v928_v58 }
 0x7ec   :  { %v930_v60 = vpop.xlane.xlu0 %929 }
 0x7ed   :  { %v938_v61 = vadd.f32 %v963_v59, %v930_v60 }
 0x7ef   :  { %940 = vst.msk [vmem:[%s1427_s7] sm:$0xff] %vm939_vm4, %v938_v61 }

</bundles_post_ra>
